<compile_context>
chip_gen: v7x
topology: tpu7x:2x2x1
jax: 0.10.0
libtpu: 0.0.40
codegen_flags: <defaults>
</compile_context>

<pallas_src>
import functools
import math

import jax
import jax.numpy as jnp
import numpy as np
from jax import lax
from jax.experimental import pallas as pl
from jax.experimental.pallas import tpu as pltpu


def _mha_fused_kernel(*refs, num_heads, depth, has_mask, compute_dtype):
    """One (batch, q-block) grid step: all heads + fused dense projection.

    Ref shapes (batch dim squeezed by BlockSpec):
      q_ref   : (tq, d_model)
      k_ref   : (S,  d_model)
      v_ref   : (S,  d_model)
      mask_ref: (tq, S)              (only when has_mask)
      w_ref   : (d_model, d_model)   PyTorch Linear weight (out, in) — untransposed
      b_ref   : (1, d_model)
      o_ref   : (tq, d_model)        dense output (lane-dense, last dim = d_model)
      s_ref   : (num_heads, tq, S)   attention probabilities (float32)
    """
    if has_mask:
        q_ref, k_ref, v_ref, mask_ref, w_ref, b_ref, o_ref, s_ref = refs
    else:
        q_ref, k_ref, v_ref, w_ref, b_ref, o_ref, s_ref = refs
        mask_ref = None

    scale = jnp.float32(1.0 / math.sqrt(depth))
    # Matches PyTorch verbatim: scaled += mask * -1e-09
    m = mask_ref[...] * jnp.float32(-1e-09) if has_mask else None

    acc = jnp.zeros(o_ref.shape, jnp.float32)
    for h in range(num_heads):  # static, unrolled; num_heads is small
        lo = h * depth
        qh = (q_ref[:, pl.ds(lo, depth)] * scale).astype(compute_dtype)  # (tq, depth)
        kh = k_ref[:, pl.ds(lo, depth)].astype(compute_dtype)            # (S,  depth)
        vh = v_ref[:, pl.ds(lo, depth)].astype(compute_dtype)            # (S,  depth)
        wh = w_ref[:, pl.ds(lo, depth)].astype(compute_dtype)            # (d_model, depth)

        # scores = (q_h / sqrt(d_k)) @ k_h^T — contraction on depth, no transpose.
        scores = lax.dot_general(qh, kh, (((1,), (1,)), ((), ())),
                                 preferred_element_type=jnp.float32)     # (tq, S)
        if m is not None:
            scores = scores + m

        # numerically-stabilized softmax; reciprocal goes to the EUP slot
        scores = scores - jnp.max(scores, axis=-1, keepdims=True)
        e = jnp.exp(scores)
        p = e * pl.reciprocal(jnp.sum(e, axis=-1, keepdims=True), approx=True)
        s_ref[h] = p  # attention_score output (float32)

        head_out = lax.dot_general(p.astype(compute_dtype), vh,
                                   (((1,), (0,)), ((), ())),
                                   preferred_element_type=jnp.float32)   # (tq, depth)
        # Fused dense: concat @ W^T == sum_h head_out_h @ W[:, h*depth:(h+1)*depth]^T
        acc = acc + lax.dot_general(head_out.astype(compute_dtype), wh,
                                    (((1,), (1,)), ((), ())),
                                    preferred_element_type=jnp.float32)  # (tq, d_model)

    o_ref[...] = (acc + b_ref[...]).astype(o_ref.dtype)


def multi_head_attention(q, k, v, dense_w, dense_b, *, num_heads, mask=None,
                         compute_dtype=jnp.float32):
    """Forward pass of MultiHeadAttention.

    q, k, v  : (B, S, d_model) float32 (already projected; forward() never
               applies wq/wk/wv).
    dense_w  : (d_model, d_model) PyTorch Linear weight (out, in).
    dense_b  : (d_model,) bias.
    Returns (output (B, S, d_model), attention_score (B, num_heads, S, S)).
    """
    B, S, d_model = q.shape
    assert d_model % num_heads == 0
    depth = d_model // num_heads

    # Tile the query axis so per-step VMEM stays bounded for long sequences
    # (128/256/512 are (8,128)-friendly); toy S just uses tq = S.
    tq = S
    for cand in (512, 256, 128):
        if S % cand == 0:
            tq = cand
            break
    n_qb = S // tq
    # TODO(synk): for very long, non-128-divisible S, pad S or pick a finer tq.

    grid = (B, n_qb)
    has_mask = mask is not None

    q_spec = pl.BlockSpec((None, tq, d_model), lambda b, qi: (b, qi, 0))
    kv_spec = pl.BlockSpec((None, S, d_model), lambda b, qi: (b, 0, 0))
    w_spec = pl.BlockSpec((d_model, d_model), lambda b, qi: (0, 0))
    b_spec = pl.BlockSpec((1, d_model), lambda b, qi: (0, 0))
    o_spec = pl.BlockSpec((None, tq, d_model), lambda b, qi: (b, qi, 0))
    s_spec = pl.BlockSpec((None, num_heads, tq, S), lambda b, qi: (b, 0, qi, 0))

    in_specs = [q_spec, kv_spec, kv_spec]
    args = [q, k, v]
    if has_mask:
        # One shared (1, 1, S, S) copy — never materialize a (B, H, S, S) mask.
        # TODO(synk): batch-/head-dependent masks would need a (b, h)-indexed spec.
        mask_arr = jnp.broadcast_to(jnp.asarray(mask, jnp.float32), (1, 1, S, S))
        in_specs.append(pl.BlockSpec((None, None, tq, S), lambda b, qi: (0, 0, qi, 0)))
        args.append(mask_arr)
    in_specs += [w_spec, b_spec]
    args += [dense_w, dense_b.reshape(1, d_model)]

    kernel = functools.partial(
        _mha_fused_kernel, num_heads=num_heads, depth=depth,
        has_mask=has_mask, compute_dtype=compute_dtype)

    out, attention_score = pl.pallas_call(
        kernel,
        out_shape=(
            jax.ShapeDtypeStruct((B, S, d_model), q.dtype),
            jax.ShapeDtypeStruct((B, num_heads, S, S), jnp.float32),
        ),
        grid=grid,
        in_specs=in_specs,
        out_specs=(o_spec, s_spec),
        compiler_params=pltpu.CompilerParams(
            dimension_semantics=("parallel", "parallel")),
    )(*args)
    return out, attention_score


def _reference(q, k, v, dense_w, dense_b, *, num_heads, mask=None):
    """Pure-JAX transcription of the PyTorch module (for correctness check)."""
    B, S, d_model = q.shape
    depth = d_model // num_heads

    def split(x):
        return x.reshape(B, S, num_heads, depth).transpose(0, 2, 1, 3)

    qh, kh, vh = split(q), split(k), split(v)
    scores = jnp.einsum("bhqd,bhkd->bhqk", qh, kh) / jnp.sqrt(jnp.float32(depth))
    if mask is not None:
        scores = scores + jnp.asarray(mask, jnp.float32) * jnp.float32(-1e-09)
    attn = jax.nn.softmax(scores, axis=-1)
    out = jnp.einsum("bhqk,bhkd->bhqd", attn, vh)
    out = out.transpose(0, 2, 1, 3).reshape(B, S, d_model)
    return out @ dense_w.T + dense_b, attn


if __name__ == "__main__":
    # Small shapes consistent with the module: batch=2, seq=8, d_model=32, heads=4.
    batch, seq, d_model, num_heads = 2, 8, 32, 4

    key = jax.random.PRNGKey(0)
    kq, kk, kv, kw, kb = jax.random.split(key, 5)

    q = jax.random.normal(kq, (batch, seq, d_model), jnp.float32)
    k = jax.random.normal(kk, (batch, seq, d_model), jnp.float32)
    v = jax.random.normal(kv, (batch, seq, d_model), jnp.float32)

    # PyTorch Linear params for `dense`: weight (out, in), bias (out,).
    # wq/wk/wv exist in __init__ but are unused in forward(), so not created here.
    dense_w = jax.random.normal(kw, (d_model, d_model), jnp.float32) * 0.05
    dense_b = jax.random.normal(kb, (d_model,), jnp.float32) * 0.05

    fn = jax.jit(functools.partial(multi_head_attention, num_heads=num_heads))

    # mask=None path (default of the module's forward)
    output, attention_score = fn(q, k, v, dense_w, dense_b)
    jax.block_until_ready((output, attention_score))
    ref_out, ref_attn = _reference(q, k, v, dense_w, dense_b, num_heads=num_heads)
    np.testing.assert_allclose(np.asarray(output), np.asarray(ref_out),
                               rtol=2e-2, atol=2e-2)
    np.testing.assert_allclose(np.asarray(attention_score), np.asarray(ref_attn),
                               rtol=2e-2, atol=2e-2)

    # mask path (shared (S, S) mask; wrapper keeps it as one (1,1,S,S) copy)
    mask = jnp.triu(jnp.ones((seq, seq), jnp.float32), k=1)
    output_m, attention_score_m = fn(q, k, v, dense_w, dense_b, mask=mask)
    jax.block_until_ready((output_m, attention_score_m))
    ref_out_m, ref_attn_m = _reference(q, k, v, dense_w, dense_b,
                                       num_heads=num_heads, mask=mask)
    np.testing.assert_allclose(np.asarray(output_m), np.asarray(ref_out_m),
                               rtol=2e-2, atol=2e-2)
    np.testing.assert_allclose(np.asarray(attention_score_m), np.asarray(ref_attn_m),
                               rtol=2e-2, atol=2e-2)

    assert output.shape == (batch, seq, d_model)
    assert attention_score.shape == (batch, num_heads, seq, seq)
    print("KERNEL_OK")
</pallas_src>

<mosaic_0001>
module attributes {stable_mosaic.version = 11 : i64} {
  func.func @_mha_fused_kernel(%arg0: i32, %arg1: i32, %arg2: memref<1x8x32xf32, #tpu.memory_space<vmem>>, %arg3: memref<1x8x32xf32, #tpu.memory_space<vmem>>, %arg4: memref<1x8x32xf32, #tpu.memory_space<vmem>>, %arg5: memref<32x32xf32, #tpu.memory_space<vmem>>, %arg6: memref<1x32xf32, #tpu.memory_space<vmem>>, %arg7: memref<1x8x32xf32, #tpu.memory_space<vmem>>, %arg8: memref<1x4x8x8xf32, #tpu.memory_space<vmem>>) attributes {dimension_semantics = [#tpu.dimension_semantics<parallel>, #tpu.dimension_semantics<parallel>], iteration_bounds = array<i64: 2, 1>, scalar_prefetch = 0 : i64, scratch_operands = 0 : i64, tpu.core_type = #tpu.core_type<tc>, window_params = [{transform_indices = @transform_0, window_bounds = array<i64: 1, 8, 32>}, {transform_indices = @transform_1, window_bounds = array<i64: 1, 8, 32>}, {transform_indices = @transform_2, window_bounds = array<i64: 1, 8, 32>}, {pipeline_mode = #tpu.pipeline_mode<synchronous>, transform_indices = @transform_3, window_bounds = array<i64: 32, 32>}, {pipeline_mode = #tpu.pipeline_mode<synchronous>, transform_indices = @transform_4, window_bounds = array<i64: 1, 32>}, {transform_indices = @transform_5, window_bounds = array<i64: 1, 8, 32>}, {transform_indices = @transform_6, window_bounds = array<i64: 1, 4, 8, 8>}]} {
    %cst = arith.constant 0.000000e+00 : f32
    %0 = vector.broadcast %cst : f32 to vector<8x32xf32>
    %c0 = arith.constant 0 : index
    %c0_0 = arith.constant 0 : index
    %c0_1 = arith.constant 0 : index
    %1 = vector.load %arg2[%c0, %c0_0, %c0_1] : memref<1x8x32xf32, #tpu.memory_space<vmem>>, vector<1x8x8xf32>
    %2 = vector.shape_cast %1 : vector<1x8x8xf32> to vector<8x8xf32>
    %cst_2 = arith.constant 0.353553385 : f32
    %3 = vector.broadcast %cst_2 : f32 to vector<8x8xf32>
    %4 = arith.mulf %2, %3 : vector<8x8xf32>
    %c0_3 = arith.constant 0 : index
    %c0_4 = arith.constant 0 : index
    %c0_5 = arith.constant 0 : index
    %5 = vector.load %arg3[%c0_3, %c0_4, %c0_5] : memref<1x8x32xf32, #tpu.memory_space<vmem>>, vector<1x8x8xf32>
    %6 = vector.shape_cast %5 : vector<1x8x8xf32> to vector<8x8xf32>
    %c0_6 = arith.constant 0 : index
    %c0_7 = arith.constant 0 : index
    %c0_8 = arith.constant 0 : index
    %7 = vector.load %arg4[%c0_6, %c0_7, %c0_8] : memref<1x8x32xf32, #tpu.memory_space<vmem>>, vector<1x8x8xf32>
    %8 = vector.shape_cast %7 : vector<1x8x8xf32> to vector<8x8xf32>
    %c0_9 = arith.constant 0 : index
    %c0_10 = arith.constant 0 : index
    %9 = vector.load %arg5[%c0_9, %c0_10] : memref<32x32xf32, #tpu.memory_space<vmem>>, vector<32x8xf32>
    %cst_11 = arith.constant dense<0.000000e+00> : vector<8x8xf32>
    %10 = tpu.matmul %4, %6, %cst_11 {dimension_numbers = #tpu.dot_dimension_numbers<[1], [1], [0], [0], [0, 0, 1, 0], [], []>} : vector<8x8xf32>, vector<8x8xf32>, vector<8x8xf32> -> vector<8x8xf32>
    %cst_12 = arith.constant dense<0xFF800000> : vector<8xf32>
    %11 = vector.multi_reduction <maximumf>, %10, %cst_12 [1] : vector<8x8xf32> to vector<8xf32>
    %12 = vector.shape_cast %11 : vector<8xf32> to vector<8x1xf32>
    %13 = vector.broadcast %12 : vector<8x1xf32> to vector<8x8xf32>
    %14 = arith.subf %10, %13 : vector<8x8xf32>
    %15 = math.exp %14 : vector<8x8xf32>
    %cst_13 = arith.constant dense<0.000000e+00> : vector<8xf32>
    %16 = vector.multi_reduction <add>, %15, %cst_13 [1] : vector<8x8xf32> to vector<8xf32>
    %17 = vector.shape_cast %16 : vector<8xf32> to vector<8x1xf32>
    %18 = tpu.reciprocal %17 {approx = true} : vector<8x1xf32> -> vector<8x1xf32>
    %19 = vector.broadcast %18 : vector<8x1xf32> to vector<8x8xf32>
    %20 = arith.mulf %15, %19 : vector<8x8xf32>
    %c0_14 = arith.constant 0 : index
    %c0_15 = arith.constant 0 : index
    %c0_16 = arith.constant 0 : index
    %c0_17 = arith.constant 0 : index
    %21 = vector.load %arg8[%c0_14, %c0_15, %c0_16, %c0_17] : memref<1x4x8x8xf32, #tpu.memory_space<vmem>>, vector<1x1x8x8xf32>
    %22 = vector.shape_cast %21 : vector<1x1x8x8xf32> to vector<8x8xf32>
    %23 = vector.shape_cast %20 : vector<8x8xf32> to vector<1x1x8x8xf32>
    tpu.vector_store %arg8[%c0_14, %c0_15, %c0_16, %c0_17], %23 {strides = array<i32>} : memref<1x4x8x8xf32, #tpu.memory_space<vmem>>, vector<1x1x8x8xf32>,
    %cst_18 = arith.constant dense<0.000000e+00> : vector<8x8xf32>
    %24 = tpu.matmul %20, %8, %cst_18 {dimension_numbers = #tpu.dot_dimension_numbers<[1], [0], [0], [1], [0, 0, 1, 1], [], []>} : vector<8x8xf32>, vector<8x8xf32>, vector<8x8xf32> -> vector<8x8xf32>
    %cst_19 = arith.constant dense<0.000000e+00> : vector<8x32xf32>
    %25 = tpu.matmul %24, %9, %cst_19 {dimension_numbers = #tpu.dot_dimension_numbers<[1], [1], [0], [0], [0, 0, 1, 0], [], []>} : vector<8x8xf32>, vector<32x8xf32>, vector<8x32xf32> -> vector<8x32xf32>
    %26 = arith.addf %0, %25 : vector<8x32xf32>
    %c0_20 = arith.constant 0 : index
    %c0_21 = arith.constant 0 : index
    %c8 = arith.constant 8 : index
    %27 = vector.load %arg2[%c0_20, %c0_21, %c8] : memref<1x8x32xf32, #tpu.memory_space<vmem>>, vector<1x8x8xf32>
    %28 = vector.shape_cast %27 : vector<1x8x8xf32> to vector<8x8xf32>
    %cst_22 = arith.constant 0.353553385 : f32
    %29 = vector.broadcast %cst_22 : f32 to vector<8x8xf32>
    %30 = arith.mulf %28, %29 : vector<8x8xf32>
    %c0_23 = arith.constant 0 : index
    %c0_24 = arith.constant 0 : index
    %c8_25 = arith.constant 8 : index
    %31 = vector.load %arg3[%c0_23, %c0_24, %c8_25] : memref<1x8x32xf32, #tpu.memory_space<vmem>>, vector<1x8x8xf32>
    %32 = vector.shape_cast %31 : vector<1x8x8xf32> to vector<8x8xf32>
    %c0_26 = arith.constant 0 : index
    %c0_27 = arith.constant 0 : index
    %c8_28 = arith.constant 8 : index
    %33 = vector.load %arg4[%c0_26, %c0_27, %c8_28] : memref<1x8x32xf32, #tpu.memory_space<vmem>>, vector<1x8x8xf32>
    %34 = vector.shape_cast %33 : vector<1x8x8xf32> to vector<8x8xf32>
    %c0_29 = arith.constant 0 : index
    %c8_30 = arith.constant 8 : index
    %35 = vector.load %arg5[%c0_29, %c8_30] : memref<32x32xf32, #tpu.memory_space<vmem>>, vector<32x8xf32>
    %cst_31 = arith.constant dense<0.000000e+00> : vector<8x8xf32>
    %36 = tpu.matmul %30, %32, %cst_31 {dimension_numbers = #tpu.dot_dimension_numbers<[1], [1], [0], [0], [0, 0, 1, 0], [], []>} : vector<8x8xf32>, vector<8x8xf32>, vector<8x8xf32> -> vector<8x8xf32>
    %cst_32 = arith.constant dense<0xFF800000> : vector<8xf32>
    %37 = vector.multi_reduction <maximumf>, %36, %cst_32 [1] : vector<8x8xf32> to vector<8xf32>
    %38 = vector.shape_cast %37 : vector<8xf32> to vector<8x1xf32>
    %39 = vector.broadcast %38 : vector<8x1xf32> to vector<8x8xf32>
    %40 = arith.subf %36, %39 : vector<8x8xf32>
    %41 = math.exp %40 : vector<8x8xf32>
    %cst_33 = arith.constant dense<0.000000e+00> : vector<8xf32>
    %42 = vector.multi_reduction <add>, %41, %cst_33 [1] : vector<8x8xf32> to vector<8xf32>
    %43 = vector.shape_cast %42 : vector<8xf32> to vector<8x1xf32>
    %44 = tpu.reciprocal %43 {approx = true} : vector<8x1xf32> -> vector<8x1xf32>
    %45 = vector.broadcast %44 : vector<8x1xf32> to vector<8x8xf32>
    %46 = arith.mulf %41, %45 : vector<8x8xf32>
    %c0_34 = arith.constant 0 : index
    %c1 = arith.constant 1 : index
    %c0_35 = arith.constant 0 : index
    %c0_36 = arith.constant 0 : index
    %47 = vector.load %arg8[%c0_34, %c1, %c0_35, %c0_36] : memref<1x4x8x8xf32, #tpu.memory_space<vmem>>, vector<1x1x8x8xf32>
    %48 = vector.shape_cast %47 : vector<1x1x8x8xf32> to vector<8x8xf32>
    %49 = vector.shape_cast %46 : vector<8x8xf32> to vector<1x1x8x8xf32>
    tpu.vector_store %arg8[%c0_34, %c1, %c0_35, %c0_36], %49 {strides = array<i32>} : memref<1x4x8x8xf32, #tpu.memory_space<vmem>>, vector<1x1x8x8xf32>,
    %cst_37 = arith.constant dense<0.000000e+00> : vector<8x8xf32>
    %50 = tpu.matmul %46, %34, %cst_37 {dimension_numbers = #tpu.dot_dimension_numbers<[1], [0], [0], [1], [0, 0, 1, 1], [], []>} : vector<8x8xf32>, vector<8x8xf32>, vector<8x8xf32> -> vector<8x8xf32>
    %cst_38 = arith.constant dense<0.000000e+00> : vector<8x32xf32>
    %51 = tpu.matmul %50, %35, %cst_38 {dimension_numbers = #tpu.dot_dimension_numbers<[1], [1], [0], [0], [0, 0, 1, 0], [], []>} : vector<8x8xf32>, vector<32x8xf32>, vector<8x32xf32> -> vector<8x32xf32>
    %52 = arith.addf %26, %51 : vector<8x32xf32>
    %c0_39 = arith.constant 0 : index
    %c0_40 = arith.constant 0 : index
    %c16 = arith.constant 16 : index
    %53 = vector.load %arg2[%c0_39, %c0_40, %c16] : memref<1x8x32xf32, #tpu.memory_space<vmem>>, vector<1x8x8xf32>
    %54 = vector.shape_cast %53 : vector<1x8x8xf32> to vector<8x8xf32>
    %cst_41 = arith.constant 0.353553385 : f32
    %55 = vector.broadcast %cst_41 : f32 to vector<8x8xf32>
    %56 = arith.mulf %54, %55 : vector<8x8xf32>
    %c0_42 = arith.constant 0 : index
    %c0_43 = arith.constant 0 : index
    %c16_44 = arith.constant 16 : index
    %57 = vector.load %arg3[%c0_42, %c0_43, %c16_44] : memref<1x8x32xf32, #tpu.memory_space<vmem>>, vector<1x8x8xf32>
    %58 = vector.shape_cast %57 : vector<1x8x8xf32> to vector<8x8xf32>
    %c0_45 = arith.constant 0 : index
    %c0_46 = arith.constant 0 : index
    %c16_47 = arith.constant 16 : index
    %59 = vector.load %arg4[%c0_45, %c0_46, %c16_47] : memref<1x8x32xf32, #tpu.memory_space<vmem>>, vector<1x8x8xf32>
    %60 = vector.shape_cast %59 : vector<1x8x8xf32> to vector<8x8xf32>
    %c0_48 = arith.constant 0 : index
    %c16_49 = arith.constant 16 : index
    %61 = vector.load %arg5[%c0_48, %c16_49] : memref<32x32xf32, #tpu.memory_space<vmem>>, vector<32x8xf32>
    %cst_50 = arith.constant dense<0.000000e+00> : vector<8x8xf32>
    %62 = tpu.matmul %56, %58, %cst_50 {dimension_numbers = #tpu.dot_dimension_numbers<[1], [1], [0], [0], [0, 0, 1, 0], [], []>} : vector<8x8xf32>, vector<8x8xf32>, vector<8x8xf32> -> vector<8x8xf32>
    %cst_51 = arith.constant dense<0xFF800000> : vector<8xf32>
    %63 = vector.multi_reduction <maximumf>, %62, %cst_51 [1] : vector<8x8xf32> to vector<8xf32>
    %64 = vector.shape_cast %63 : vector<8xf32> to vector<8x1xf32>
    %65 = vector.broadcast %64 : vector<8x1xf32> to vector<8x8xf32>
    %66 = arith.subf %62, %65 : vector<8x8xf32>
    %67 = math.exp %66 : vector<8x8xf32>
    %cst_52 = arith.constant dense<0.000000e+00> : vector<8xf32>
    %68 = vector.multi_reduction <add>, %67, %cst_52 [1] : vector<8x8xf32> to vector<8xf32>
    %69 = vector.shape_cast %68 : vector<8xf32> to vector<8x1xf32>
    %70 = tpu.reciprocal %69 {approx = true} : vector<8x1xf32> -> vector<8x1xf32>
    %71 = vector.broadcast %70 : vector<8x1xf32> to vector<8x8xf32>
    %72 = arith.mulf %67, %71 : vector<8x8xf32>
    %c0_53 = arith.constant 0 : index
    %c2 = arith.constant 2 : index
    %c0_54 = arith.constant 0 : index
    %c0_55 = arith.constant 0 : index
    %73 = vector.load %arg8[%c0_53, %c2, %c0_54, %c0_55] : memref<1x4x8x8xf32, #tpu.memory_space<vmem>>, vector<1x1x8x8xf32>
    %74 = vector.shape_cast %73 : vector<1x1x8x8xf32> to vector<8x8xf32>
    %75 = vector.shape_cast %72 : vector<8x8xf32> to vector<1x1x8x8xf32>
    tpu.vector_store %arg8[%c0_53, %c2, %c0_54, %c0_55], %75 {strides = array<i32>} : memref<1x4x8x8xf32, #tpu.memory_space<vmem>>, vector<1x1x8x8xf32>,
    %cst_56 = arith.constant dense<0.000000e+00> : vector<8x8xf32>
    %76 = tpu.matmul %72, %60, %cst_56 {dimension_numbers = #tpu.dot_dimension_numbers<[1], [0], [0], [1], [0, 0, 1, 1], [], []>} : vector<8x8xf32>, vector<8x8xf32>, vector<8x8xf32> -> vector<8x8xf32>
    %cst_57 = arith.constant dense<0.000000e+00> : vector<8x32xf32>
    %77 = tpu.matmul %76, %61, %cst_57 {dimension_numbers = #tpu.dot_dimension_numbers<[1], [1], [0], [0], [0, 0, 1, 0], [], []>} : vector<8x8xf32>, vector<32x8xf32>, vector<8x32xf32> -> vector<8x32xf32>
    %78 = arith.addf %52, %77 : vector<8x32xf32>
    %c0_58 = arith.constant 0 : index
    %c0_59 = arith.constant 0 : index
    %c24 = arith.constant 24 : index
    %79 = vector.load %arg2[%c0_58, %c0_59, %c24] : memref<1x8x32xf32, #tpu.memory_space<vmem>>, vector<1x8x8xf32>
    %80 = vector.shape_cast %79 : vector<1x8x8xf32> to vector<8x8xf32>
    %cst_60 = arith.constant 0.353553385 : f32
    %81 = vector.broadcast %cst_60 : f32 to vector<8x8xf32>
    %82 = arith.mulf %80, %81 : vector<8x8xf32>
    %c0_61 = arith.constant 0 : index
    %c0_62 = arith.constant 0 : index
    %c24_63 = arith.constant 24 : index
    %83 = vector.load %arg3[%c0_61, %c0_62, %c24_63] : memref<1x8x32xf32, #tpu.memory_space<vmem>>, vector<1x8x8xf32>
    %84 = vector.shape_cast %83 : vector<1x8x8xf32> to vector<8x8xf32>
    %c0_64 = arith.constant 0 : index
    %c0_65 = arith.constant 0 : index
    %c24_66 = arith.constant 24 : index
    %85 = vector.load %arg4[%c0_64, %c0_65, %c24_66] : memref<1x8x32xf32, #tpu.memory_space<vmem>>, vector<1x8x8xf32>
    %86 = vector.shape_cast %85 : vector<1x8x8xf32> to vector<8x8xf32>
    %c0_67 = arith.constant 0 : index
    %c24_68 = arith.constant 24 : index
    %87 = vector.load %arg5[%c0_67, %c24_68] : memref<32x32xf32, #tpu.memory_space<vmem>>, vector<32x8xf32>
    %cst_69 = arith.constant dense<0.000000e+00> : vector<8x8xf32>
    %88 = tpu.matmul %82, %84, %cst_69 {dimension_numbers = #tpu.dot_dimension_numbers<[1], [1], [0], [0], [0, 0, 1, 0], [], []>} : vector<8x8xf32>, vector<8x8xf32>, vector<8x8xf32> -> vector<8x8xf32>
    %cst_70 = arith.constant dense<0xFF800000> : vector<8xf32>
    %89 = vector.multi_reduction <maximumf>, %88, %cst_70 [1] : vector<8x8xf32> to vector<8xf32>
    %90 = vector.shape_cast %89 : vector<8xf32> to vector<8x1xf32>
    %91 = vector.broadcast %90 : vector<8x1xf32> to vector<8x8xf32>
    %92 = arith.subf %88, %91 : vector<8x8xf32>
    %93 = math.exp %92 : vector<8x8xf32>
    %cst_71 = arith.constant dense<0.000000e+00> : vector<8xf32>
    %94 = vector.multi_reduction <add>, %93, %cst_71 [1] : vector<8x8xf32> to vector<8xf32>
    %95 = vector.shape_cast %94 : vector<8xf32> to vector<8x1xf32>
    %96 = tpu.reciprocal %95 {approx = true} : vector<8x1xf32> -> vector<8x1xf32>
    %97 = vector.broadcast %96 : vector<8x1xf32> to vector<8x8xf32>
    %98 = arith.mulf %93, %97 : vector<8x8xf32>
    %c0_72 = arith.constant 0 : index
    %c3 = arith.constant 3 : index
    %c0_73 = arith.constant 0 : index
    %c0_74 = arith.constant 0 : index
    %99 = vector.load %arg8[%c0_72, %c3, %c0_73, %c0_74] : memref<1x4x8x8xf32, #tpu.memory_space<vmem>>, vector<1x1x8x8xf32>
    %100 = vector.shape_cast %99 : vector<1x1x8x8xf32> to vector<8x8xf32>
    %101 = vector.shape_cast %98 : vector<8x8xf32> to vector<1x1x8x8xf32>
    tpu.vector_store %arg8[%c0_72, %c3, %c0_73, %c0_74], %101 {strides = array<i32>} : memref<1x4x8x8xf32, #tpu.memory_space<vmem>>, vector<1x1x8x8xf32>,
    %cst_75 = arith.constant dense<0.000000e+00> : vector<8x8xf32>
    %102 = tpu.matmul %98, %86, %cst_75 {dimension_numbers = #tpu.dot_dimension_numbers<[1], [0], [0], [1], [0, 0, 1, 1], [], []>} : vector<8x8xf32>, vector<8x8xf32>, vector<8x8xf32> -> vector<8x8xf32>
    %cst_76 = arith.constant dense<0.000000e+00> : vector<8x32xf32>
    %103 = tpu.matmul %102, %87, %cst_76 {dimension_numbers = #tpu.dot_dimension_numbers<[1], [1], [0], [0], [0, 0, 1, 0], [], []>} : vector<8x8xf32>, vector<32x8xf32>, vector<8x32xf32> -> vector<8x32xf32>
    %104 = arith.addf %78, %103 : vector<8x32xf32>
    %c0_77 = arith.constant 0 : index
    %c0_78 = arith.constant 0 : index
    %105 = vector.load %arg6[%c0_77, %c0_78] : memref<1x32xf32, #tpu.memory_space<vmem>>, vector<1x32xf32>
    %106 = vector.broadcast %105 : vector<1x32xf32> to vector<8x32xf32>
    %107 = arith.addf %104, %106 : vector<8x32xf32>
    %c0_79 = arith.constant 0 : index
    %c0_80 = arith.constant 0 : index
    %c0_81 = arith.constant 0 : index
    %108 = vector.load %arg7[%c0_79, %c0_80, %c0_81] : memref<1x8x32xf32, #tpu.memory_space<vmem>>, vector<1x8x32xf32>
    %109 = vector.shape_cast %108 : vector<1x8x32xf32> to vector<8x32xf32>
    %110 = vector.shape_cast %107 : vector<8x32xf32> to vector<1x8x32xf32>
    tpu.vector_store %arg7[%c0_79, %c0_80, %c0_81], %110 {strides = array<i32>} : memref<1x8x32xf32, #tpu.memory_space<vmem>>, vector<1x8x32xf32>,
    return
  }
  func.func @transform_0(%arg0: i32, %arg1: i32) -> (i32, i32, i32) {
    %c0_i32 = arith.constant 0 : i32
    %c0_i32_0 = arith.constant 0 : i32
    return %arg0, %arg1, %c0_i32 : i32, i32, i32
  }
  func.func @transform_1(%arg0: i32, %arg1: i32) -> (i32, i32, i32) {
    %c0_i32 = arith.constant 0 : i32
    %c0_i32_0 = arith.constant 0 : i32
    %c0_i32_1 = arith.constant 0 : i32
    return %arg0, %c0_i32, %c0_i32_0 : i32, i32, i32
  }
  func.func @transform_2(%arg0: i32, %arg1: i32) -> (i32, i32, i32) {
    %c0_i32 = arith.constant 0 : i32
    %c0_i32_0 = arith.constant 0 : i32
    %c0_i32_1 = arith.constant 0 : i32
    return %arg0, %c0_i32, %c0_i32_0 : i32, i32, i32
  }
  func.func @transform_3(%arg0: i32, %arg1: i32) -> (i32, i32) {
    %c0_i32 = arith.constant 0 : i32
    %c0_i32_0 = arith.constant 0 : i32
    %c0_i32_1 = arith.constant 0 : i32
    return %c0_i32, %c0_i32_0 : i32, i32
  }
  func.func @transform_4(%arg0: i32, %arg1: i32) -> (i32, i32) {
    %c0_i32 = arith.constant 0 : i32
    %c0_i32_0 = arith.constant 0 : i32
    %c0_i32_1 = arith.constant 0 : i32
    return %c0_i32, %c0_i32_0 : i32, i32
  }
  func.func @transform_5(%arg0: i32, %arg1: i32) -> (i32, i32, i32) {
    %c0_i32 = arith.constant 0 : i32
    %c0_i32_0 = arith.constant 0 : i32
    return %arg0, %arg1, %c0_i32 : i32, i32, i32
  }
  func.func @transform_6(%arg0: i32, %arg1: i32) -> (i32, i32, i32, i32) {
    %c0_i32 = arith.constant 0 : i32
    %c0_i32_0 = arith.constant 0 : i32
    %c0_i32_1 = arith.constant 0 : i32
    return %arg0, %c0_i32, %arg1, %c0_i32_0 : i32, i32, i32, i32
  }
}

</mosaic_0001>

<bundles_post_ra>
// kernel: multi_head_attention.1
= control target key start
LH: loop header
LB: loop body
LE: loop exit
PB: predicated region body
PF: predicated region fallthrough
CT: control target
= control target key end

     0   :  { %s2796_s0 = inlined_call_operand.hbm [shape: f32[2,8,32], index: 0, kind: input, shape index: {}]   ;;  %s2797_s1 = inlined_call_operand.hbm [shape: f32[2,8,32], index: 1, kind: input, shape index: {}]   ;;  %s2798_s2 = inlined_call_operand.hbm [shape: f32[2,8,32], index: 2, kind: input, shape index: {}]   ;;  %s2799_s3 = inlined_call_operand.hbm [shape: f32[32,32], index: 3, kind: input, shape index: {}]   ;;  %s2800_s4 = inlined_call_operand.vmem [shape: f32[1,32], index: 4, kind: input, shape index: {}]   ;;  %s2801_s5 = inlined_call_operand.hbm [shape: f32[2,8,32], index: 5, kind: output, shape index: {0}]   ;;  %s2802_s6 = inlined_call_operand.hbm [shape: f32[2,4,8,8], index: 6, kind: output, shape index: {1}]  }
   0x1   :  { %2821 = sst [smem:[#allocation24_spill]] %s2797_s1 }
   0x2   :  { %2822 = sst [smem:[#allocation25_spill]] %s2800_s4 }
   0x3   :  { %2823 = sst [smem:[#allocation26_spill]] %s2801_s5 }
   0x4   :  { %2824 = sst [smem:[#allocation27_spill]] %s2802_s6 }
   0x5   :  { %12 = vsyncpa [#allocation3], 0 }
   0x6   :  { %14 = vsyncpa [#allocation3 + $0x1], 0 }
   0x7   :  { %15 = vsyncpa [#allocation6], 0 }
   0x8   :  { %17 = vsyncpa [#allocation6 + $0x1], 0 }
   0x9   :  { %18 = vsyncpa [#allocation9], 0 }
   0xa   :  { %19 = vsyncpa [#allocation4], 0 }
   0xb   :  { %21 = vsyncpa [#allocation4 + $0x1], 0 }
   0xc   :  { %22 = vsyncpa [#allocation12], 0 }
   0xd   :  { %24 = vsyncpa [#allocation12 + $0x1], 0  ;;  %s2318_s21 = smov 0   ;;  %s2320_s22 = smov 0  }
   0xe   :  { %s2322_s23 = smov 0   ;;  %s2324_s24 = smov 0  }
   0xf   :  { %s2326_s25 = smov 0   ;;  %s2328_s26 = smov 0  }
  0x10 LB: > { %2825 = sst [smem:[#allocation18_spill]] %s2245_s21  ;;  %s42_s27 = sadd.s32 1, %s2261_s25  ;;  %s2265_s26 = sphi %s2328_s26, %s30_s26   ;;  %s2261_s25 = sphi %s2326_s25, %s2861_s25   ;;  %s2257_s24 = sphi %s2324_s24, %s2860_s24   ;;  %s2253_s23 = sphi %s2322_s23, %s2864_s23   ;;  %s2249_s22 = sphi %s2320_s22, %s2863_s22   ;;  %s2245_s21 = sphi %s2318_s21, %s2862_s21  }
  0x11   : > { %2826 = sst [smem:[#allocation19_spill]] %s2261_s25  ;;  %s51_s28 = sadd.s32 1, %s2253_s23 }
  0x12   : > { %2827 = sst [smem:[#allocation20_spill]] %s2265_s26  ;;  %p44_p0 = scmp.ge.s32.totalorder %s42_s27, 2 }
  0x13   : > { %p2803_p1 = scmp.ne.s32.totalorder %s2253_s23, %s2249_s22  ;;  %p59_p2 = scmp.eq.s32.totalorder %s2265_s26, 0 }
  0x14   : > { %s2866_s27 = smov (%p44_p0, %s42_s27), 0  ;;  %p1917_p5 = scmp.lt.s32.totalorder %s2265_s26, 2 }
  0x15   : > { %2828 = sst [smem:[#allocation21_spill]] %s2866_s27  ;;  %p60_p4 = por %p59_p2, %p2803_p1 }
  0x16   : > { %s46_s29 = ssub.s32 %s2261_s25, %s2866_s27  ;;  %s2804_s30 = sand.u32 1, %s2253_s23  }
  0x17   : > { %p49_p6 = scmp.eq.s32.totalorder %s46_s29, 0  ;;  %s2365_s7 = sshll.u32 %s2804_s30, 3 }
  0x18   : > { %s2368_s8 = sshll.u32 %s2261_s25, 7  ;;  %p2370_p7 = pnand %p1917_p5, %p60_p4 }
  0x19   : > { %s2375_s10 = scalar_select %p49_p6, %s2253_s23, %s51_s28  }
  0x1a   : > { %s2829_s9 = scalar_select %p2370_p7, 1, 0 }
  0x1b   : > { %2830 = sst [smem:[#allocation22_spill]] %s2375_s10  ;;  %s273_s11 = sand.u32 1, %s2265_s26  }
  0x1c   : > { %s2831_s1 = sld [smem:[#allocation24_spill]]  ;;  %s277_s15 = scalar_lea.vmem [#allocation5], %s2365_s7 }
  0x1d   : > { %s284_s16 = sshll.u32 %s277_s15, 4  ;;  %s2387_s17 = scalar_lea.sflag [#allocation6], %s273_s11  ;;  %s2385_s16 = int_to_ptr.vmem [resolvable:$true] %s284_s16 }
  0x1e   : > { %p2393_p9 = pneg %p2370_p7 }
  0x20   : > { %s2832_s19 = scalar_select %p2393_p9, 1, 0 }
  0x22   : > { %s2382_s14 = scalar_lea.hbm %s2831_s1, %s2368_s8  ;;  %s2030_s29 = scalar_lea.hbm %s2831_s1, 256 }
  0x23   : > { %s2025_s18 = scalar_lea.hbm %s2382_s14, 128  ;;  %p2031_p12 = scmp.lt.u32.totalorder %s2382_s14, %s2831_s1 }
  0x24   : > { %p2026_p8 = scmp.ne.s32.totalorder %s2382_s14, %s2025_s18  ;;  %p2032_p13 = scmp.lt.u32.totalorder %s2030_s29, %s2025_s18 }
  0x25   : > { %p2034_p2 = scmp.lt.u32.totalorder %s2025_s18, %s2382_s14 }
  0x26   : > { %p2028_p10 = pnand %p2393_p9, %p2026_p8  ;;  %p2033_p0 = por %p2032_p13, %p2031_p12 }
  0x28   : > { %p2029_p11 = pneg %p2028_p10  ;;  %p2035_p4 = por %p2034_p2, %p2033_p0 }
  0x2a   : > { %p2036_p5 = pnand %p2035_p4, %p2029_p11 }
  0x2c   : > { %2039 = shalt.err (!%p2036_p5)
}
  0x2d   : > { %s2040_s11 = scalar_lea.vmem %s2385_s16, 128  ;;  %s2267_s15 = smov [#allocation5]  }
  0x2e   : > { %p2041_p6 = scmp.ne.s32.totalorder %s2385_s16, %s2040_s11  ;;  %s2045_s20 = sshll.u32 %s2267_s15, 4  ;;  %s2046_s20 = int_to_ptr.vmem [resolvable:$false] %s2045_s20 }
  0x2f   : > { %s2047_s28 = scalar_lea.vmem %s2046_s20, 256  ;;  %p2048_p3 = scmp.lt.s32.totalorder %s2385_s16, %s2046_s20 }
  0x30   : > { %p2043_p8 = pnand %p2041_p6, %p2393_p9  ;;  %p2049_p1 = scmp.lt.s32.totalorder %s2047_s28, %s2040_s11 }
  0x32   : > { %p2044_p10 = pneg %p2043_p8  ;;  %p2050_p12 = por %p2049_p1, %p2048_p3 }
  0x34   : > { %p2051_p13 = pnand %p2050_p12, %p2044_p10 }
  0x36   : > { %2054 = shalt.err (!%p2051_p13)
}
  0x37   : > { %1905 = dma.hbm_to_vmem [thread:$0]  (!%p2370_p7), %s2382_s14, 128, %s2385_s16, %s2387_s17  }
  0x38   : > { %s2418_s18 = sadd.s32 4294967295, %s2265_s26   ;;  %s1668_s29 = sadd.s32 4294967294, %s2265_s26  }
  0x39   : > { %p64_p1 = scmp.ne.s32.totalorder %s2249_s22, %s2245_s21  ;;  %p2810_p3 = scmp.eq.s32.totalorder %s2418_s18, 0 }
  0x3a   : > { %p184_p11 = scmp.eq.s32.totalorder %s2418_s18, 1  ;;  %p190_p0 = scmp.eq.s32.totalorder %s1668_s29, 1 }
  0x3b   : > { %p1669_p2 = scmp.ge.s32.totalorder %s2265_s26, 1  ;;  %p2428_p4 = por %p2810_p3, %p64_p1 }
  0x3c   : > { %p2834_p5 = scmp.ne.s32.totalorder %s2253_s23, %s2249_s22  ;;  %p2439_p8 = por %p190_p0, %p64_p1 }
  0x3d   : > { %s2833_s12 = scalar_select %p2428_p4, 1, 0 }
  0x3e   : > { %p2435_p6 = por %p184_p11, %p2834_p5  ;;  %p225_p10 = scmp.lt.s32.totalorder %s2265_s26, 3 }
  0x3f   : > { %s2836_s16 = scalar_select %p2439_p8, 1, 0 }
  0x40   : > { %s2835_s14 = scalar_select %p2435_p6, 1, 0 }
  0x41   : > { %2837 = sst [smem:[#allocation23_spill]] %s2836_s16  ;;  %p2444_p12 = pnand %p1669_p2, %p225_p10 }
  0x42   : > { %s2268_s11 = smov [#allocation8]   ;;  %s2462_s30 = scalar_lea.hbm %s2796_s0, %s2368_s8 }
  0x43   : > { %s2838_s13 = scalar_select %p2444_p12, 1, 0 }
  0x44   : > { %s237_s15 = sshll.u32 %s2268_s11, 4  ;;  %p1895_p13 = pneg %p2444_p12  ;;  %s2448_s15 = int_to_ptr.vmem [resolvable:$true] %s237_s15 }
  0x45   : > { %s258_s1 = scalar_lea.vmem [#allocation2], %s2365_s7  ;;  %s2055_s10 = scalar_lea.hbm %s2799_s3, 512 }
  0x46   : > { %p2454_p11 = pnand %p1895_p13, %p2810_p3  ;;  %s266_s27 = sshll.u32 %s258_s1, 4  ;;  %s2465_s27 = int_to_ptr.vmem [resolvable:$true] %s266_s27 }
  0x47   : > { %p2056_p1 = scmp.ne.s32.totalorder %s2799_s3, %s2055_s10  ;;  %p2062_p10 = scmp.lt.u32.totalorder %s2055_s10, %s2799_s3 }
  0x48   : > { %p2057_p0 = pneg %p2454_p11 }
  0x4a   : > { %p2058_p2 = pnand %p2057_p0, %p2056_p1 }
  0x4c   : > { %p2059_p5 = pneg %p2058_p2 }
  0x4e   : > { %p2064_p13 = pnand %p2062_p10, %p2059_p5 }
  0x50   : > { %2067 = shalt.err (!%p2064_p13)
}
  0x51   : > { %s2068_s1 = scalar_lea.vmem %s2448_s15, 512  ;;  %p2076_p4 = scmp.lt.s32.totalorder %s2448_s15, %s2448_s15 }
  0x52   : > { %p2069_p3 = scmp.ne.s32.totalorder %s2448_s15, %s2068_s1  ;;  %p2077_p12 = scmp.lt.s32.totalorder %s2068_s1, %s2068_s1 }
  0x54   : > { %p2071_p8 = pnand %p2069_p3, %p2057_p0  ;;  %p2078_p7 = por %p2077_p12, %p2076_p4 }
  0x56   : > { %p2072_p6 = pneg %p2071_p8 }
  0x58   : > { %p2079_p9 = pnand %p2078_p7, %p2072_p6 }
  0x5a   : > { %2082 = shalt.err (!%p2079_p9)
}
  0x5b   : > { %s2269_s25 = smov 128   ;;  %s2270_s26 = smov 8  }
  0x5c   : > { %1898 = dma.hbm_to_vmem [thread:$0]  (!%p2454_p11), %s2799_s3, 512, %s2448_s15, [#allocation9], %s2269_s25, %s2269_s25, %s2270_s26  }
  0x5d   : > { %s2840_s11 = sand.u32 1, %s2253_s23   ;;  %s2083_s29 = scalar_lea.hbm %s2462_s30, 128 }
  0x5e   : > { %s255_s28 = scalar_lea.sflag [#allocation3], %s2840_s11  ;;  %p2084_p7 = scmp.ne.s32.totalorder %s2462_s30, %s2083_s29 }
  0x5f   : > { %p2841_p9 = scmp.ne.s32.totalorder %s2832_s19, 0  ;;  %s2088_s5 = scalar_lea.hbm %s2796_s0, 256 }
  0x60   : > { %p2089_p6 = scmp.lt.u32.totalorder %s2462_s30, %s2796_s0  ;;  %p2090_p8 = scmp.lt.u32.totalorder %s2088_s5, %s2083_s29 }
  0x61   : > { %p2086_p3 = pnand %p2084_p7, %p2841_p9  ;;  %p2092_p1 = scmp.lt.u32.totalorder %s2083_s29, %s2462_s30 }
  0x62   : > { %p2091_p12 = por %p2090_p8, %p2089_p6 }
  0x63   : > { %p2087_p4 = pneg %p2086_p3 }
  0x64   : > { %p2093_p0 = por %p2092_p1, %p2091_p12 }
  0x66   : > { %p2094_p11 = pnand %p2093_p0, %p2087_p4 }
  0x68   : > { %2097 = shalt.err (!%p2094_p11)
}
  0x69   : > { %s2098_s15 = scalar_lea.vmem %s2465_s27, 128  ;;  %s2271_s21 = smov [#allocation2]  }
  0x6a   : > { %p2099_p2 = scmp.ne.s32.totalorder %s2465_s27, %s2098_s15  ;;  %s2103_s20 = sshll.u32 %s2271_s21, 4  ;;  %s2104_s20 = int_to_ptr.vmem [resolvable:$false] %s2103_s20 }
  0x6b   : > { %s2105_s4 = scalar_lea.vmem %s2104_s20, 256  ;;  %p2106_p13 = scmp.lt.s32.totalorder %s2465_s27, %s2104_s20 }
  0x6c   : > { %p2101_p5 = pnand %p2099_p2, %p2841_p9  ;;  %p2107_p7 = scmp.lt.s32.totalorder %s2105_s4, %s2098_s15 }
  0x6e   : > { %p2102_p10 = pneg %p2101_p5  ;;  %p2108_p3 = por %p2107_p7, %p2106_p13 }
  0x70   : > { %p2109_p6 = pnand %p2108_p3, %p2102_p10 }
  0x72   : > { %2112 = shalt.err (!%p2109_p6)
}
  0x73   : > { %p2842_p4 = scmp.ne.s32.totalorder %s2829_s9, 0  ;;  %s2515_s25 = scalar_lea.hbm %s2798_s2, %s2368_s8 }
  0x74   : > { %s295_s26 = scalar_lea.vmem [#allocation7], %s2365_s7  ;;  %s2113_s16 = scalar_lea.hbm %s2515_s25, 128 }
  0x75   : > { %1902 = dma.hbm_to_vmem [thread:$0]  (!%p2842_p4), %s2462_s30, 128, %s2465_s27, %s255_s28  }
  0x76   : > { %s302_s10 = sshll.u32 %s295_s26, 4  ;;  %p2114_p8 = scmp.ne.s32.totalorder %s2515_s25, %s2113_s16  ;;  %s303_s10 = int_to_ptr.vmem [resolvable:$true] %s302_s10 }
  0x77   : > { %s2118_s27 = scalar_lea.hbm %s2798_s2, 256  ;;  %p2119_p0 = scmp.lt.u32.totalorder %s2515_s25, %s2798_s2 }
  0x78   : > { %p2116_p12 = pnand %p2114_p8, %p2841_p9  ;;  %p2120_p11 = scmp.lt.u32.totalorder %s2118_s27, %s2113_s16 }
  0x79   : > { %p2122_p5 = scmp.lt.u32.totalorder %s2113_s16, %s2515_s25 }
  0x7a   : > { %p2117_p1 = pneg %p2116_p12  ;;  %p2121_p2 = por %p2120_p11, %p2119_p0 }
  0x7c   : > { %p2123_p10 = por %p2122_p5, %p2121_p2 }
  0x7e   : > { %p2124_p13 = pnand %p2123_p10, %p2117_p1 }
  0x80   : > { %2127 = shalt.err (!%p2124_p13)
}
  0x81   : > { %s2128_s7 = scalar_lea.vmem %s303_s10, 128  ;;  %s2272_s8 = smov [#allocation7]  }
  0x82   : > { %p2129_p7 = scmp.ne.s32.totalorder %s303_s10, %s2128_s7  ;;  %s2133_s1 = sshll.u32 %s2272_s8, 4  ;;  %s2134_s1 = int_to_ptr.vmem [resolvable:$false] %s2133_s1 }
  0x83   : > { %s2135_s15 = scalar_lea.vmem %s2134_s1, 256  ;;  %p2136_p8 = scmp.lt.s32.totalorder %s303_s10, %s2134_s1 }
  0x84   : > { %p2131_p3 = pnand %p2129_p7, %p2841_p9  ;;  %p2137_p12 = scmp.lt.s32.totalorder %s2135_s15, %s2128_s7 }
  0x86   : > { %p2132_p6 = pneg %p2131_p3  ;;  %p2138_p4 = por %p2137_p12, %p2136_p8 }
  0x88   : > { %p2139_p0 = pnand %p2138_p4, %p2132_p6 }
  0x8a   : > { %2142 = shalt.err (!%p2139_p0)
}
  0x8b   : > { %p2843_p11 = scmp.ne.s32.totalorder %s2829_s9, 0  ;;  %p2844_p1 = scmp.ne.s32.totalorder %s2838_s13, 0 }
  0x8c   : > { %s2539_s19 = sand.u32 (!%p2844_p1), 1, %s2249_s22   ;;  %p2845_p9 = scmp.ne.s32.totalorder (!%p2844_p1), %s2833_s12, 0 }
  0x8d   : > { %1908 = dma.hbm_to_vmem [thread:$0]  (!%p2843_p11), %s2515_s25, 128, %s303_s10, %s2387_s17  }
  0x8e   : > { %311 = sbr.rel (%p2844_p1) target bundleno = 2932 (0xb74), region = 40  ;;  %s2542_s21 = sshll.u32 (!%p2844_p1), %s2539_s19, 3 }
  0x8f   : > { %s314_s20 = scalar_lea.sflag (!%p2844_p1), [#allocation3], %s2539_s19  ;;  %s317_s4 = scalar_lea.vmem (!%p2844_p1), [#allocation2], %s2542_s21 }
  0x95   : > { %2224 = dma.done.wait (%p2845_p9), %s314_s20, 128  }
  0x96   : > { %2226 = vsyncadd (%p2845_p9), %s314_s20, 4294967168  ;;  %s322_s9 = sand.u32 1, %s2418_s18   ;;  %s326_s13 = scalar_lea.vmem [#allocation5], %s2542_s21 }
  0x97   : > { %s323_s17 = scalar_lea.sflag [#allocation6], %s322_s9 }
  0x98   : > { %2228 = dma.done.wait (%p2845_p9), %s323_s17, 256  }
  0x99   : > { %2230 = vsyncadd (%p2845_p9), %s323_s17, 4294967040  ;;  %s335_s5 = scalar_lea.vmem [#allocation7], %s2542_s21  ;;  %p2846_p4 = scmp.eq.s32.totalorder %s2418_s18, 0 }
  0x9b   : > { %2232 = dma.done.wait (%p2846_p4), [#allocation9], 512   ;;  %p2847_p2 = pmov %p2846_p4 }
  0x9c   : > { %v2273_v0 = vmov 0.0   ;;  %vm2274_vm0 = vmmov 0   ;;  %vm391_vm1 = vcmask 64512   ;;  %v2567_v1 = vld [vmem:[%s326_s13] sm:$0xff]  ;;  %v383_v2 = vld [vmem:[%s317_s4] sm:$0xff]  ;;  %s2275_s18 = smov 120  }
  0x9d   : > { %2234 = vsyncadd (%p2847_p2), [#allocation9], 4294966784  ;;  %1765 = vmatprep.subr.mxu1 %v2273_v0  ;;  %1767 = vmatprep.mubr.msk.f32.mxu1 %vm2274_vm0, %v2273_v0  ;;  %v2571_v3 = vmul.f32 0.35355338, %v383_v2  ;;  %v2586_v12 = vld [vmem:[%s335_s5] sm:$0xff]  ;;  %s1684_s12 = sshll.u32 %s2539_s19, 5 }
  0x9e   : > { %1780 = vmatprep.subr.mxu0 %v2273_v0  ;;  %1782 = vmatprep.mubr.msk.f32.mxu0 %vm2274_vm0, %v2273_v0  ;;  %s2591_s6 = scalar_lea.vmem [#allocation11], %s1684_s12  ;;  %v2276_v29 = vmov 0.0|0.0   ;;  %v387_v30 = vld [vmem:[#allocation8] sm:$0xff]  ;;  %v388_v31 = vld [vmem:[#allocation8 + $0x8] sm:$0xff]  ;;  %v389_v33 = vld [vmem:[#allocation8 + $0x10] sm:$0xff]  ;;  %s2277_s25 = smov 112  }
  0x9f   : > { %1766 = vmatpush3.xpose.msk.msra.mxu1 %vm391_vm1, %v2567_v1  ;;  %565 = vrot.lane.b32.xlu1 %v2567_v1, %s2275_s18  ;;  %v1858_v32 = vpack.c.bf16 %v388_v31, %v387_v30  ;;  %v390_v34 = vld [vmem:[#allocation8 + $0x18] sm:$0xff]  ;;  %v2608_v36 = vpack.i.bf16 %v388_v31, %v387_v30  ;;  %vm2622_vm2 = vmpackc.low %vm391_vm1, %vm391_vm1  ;;  %s2278_s26 = smov 104   ;;  %s1728_s10 = sshll.u32 %s2257_s24, 9 }
  0xa0   : > { %1770 = vmatprep.subr.mxu1 %v2273_v0  ;;  %v1862_v35 = vpack.c.bf16 %v390_v34, %v389_v33  ;;  %v2614_v37 = vpack.i.bf16 %v390_v34, %v389_v33  ;;  %s1497_s16 = sshll.u32 %s2591_s6, 4  ;;  %s2850_s27 = sld [smem:[#allocation27_spill]]  ;;  %s2713_s16 = int_to_ptr.vmem [resolvable:$true] %s1497_s16 }
  0xa1   : > { %s1469_s28 = scalar_lea.sflag [#allocation12], %s2539_s19  ;;  %s2143_s7 = scalar_lea.vmem %s2713_s16, 512 }
  0xa2   : > { %1768 = vmatmul.mubr.msk.f32.vlgmr.msra.gmra.mrb[0].mxu1 %vm391_vm1, %v2571_v3  ;;  %p2144_p5 = scmp.ne.s32.totalorder %s2713_s16, %s2143_s7  ;;  %p2851_p10 = scmp.ne.s32.totalorder %s2835_s14, 0 }
  0xa3   : > { %1772 = vmatprep.mubr.msk.f32.mxu1 %vm2274_vm0, %v2273_v0  ;;  %562 = vrot.lane.b32.xlu1 %v2571_v3, %s2275_s18  ;;  %s2279_s8 = smov [#allocation11]  }
  0xa4   : > { %1771 = vmatpush3.msra.mxu1 %v2586_v12  ;;  %p2145_p13 = pnand %p2144_p5, %p2851_p10  ;;  %s2147_s1 = sshll.u32 %s2279_s8, 4  ;;  %s2148_s1 = int_to_ptr.vmem [resolvable:$false] %s2147_s1 }
  0xa5   : > { %1775 = vmatprep.subr.mxu1 %v2273_v0  ;;  %s2149_s15 = scalar_lea.vmem %s2148_s1, 1024  ;;  %p2150_p3 = scmp.lt.s32.totalorder %s2713_s16, %s2148_s1 }
  0xa6   : > { %s2711_s30 = scalar_lea.hbm %s2850_s27, %s1728_s10  ;;  %p2146_p7 = pneg %p2145_p13 }
  0xa7   : > { %p2151_p6 = scmp.lt.s32.totalorder %s2149_s15, %s2143_s7 }
  0xa9   : > { %p2152_p8 = por %p2151_p6, %p2150_p3 }
  0xab   : > { %p2153_p12 = pnand %p2152_p8, %p2146_p7 }
 0x111   : > { %v566_v14 = vpop.permute.xlu1 %565 }
 0x115   : > { %v563_v17 = vpop.permute.xlu1 %562 }
 0x175   : > { %v464_v4 = vpop.f32.mrb[0].mxu1 }
 0x176   : > { %v1769_v5 = vpop.f32.mrb[1].mxu1  ;;  %v468_v6 = vsel %vm391_vm1, %v464_v4, -inf }
 0x177   : > { %469 = vmax.xlane.f32.xlu0 %v468_v6 }
 0x204   : > { %v470_v7 = vpop.xlane.xlu0 %469 }
 0x205   : > { %v471_v8 = vsub.f32 %v464_v4, %v470_v7 }
 0x207   : > { %v472_v9 = vmul.f32 1.442695, %v471_v8 }
 0x209   : > { %2009 = vpow2.f32 %v472_v9 }
 0x213   : > { %v2010_v10 = vpop.eup %2009 }
 0x214   : > { %v474_v11 = vsel %vm391_vm1, %v2010_v10, 0.0 }
 0x215   : > { %475 = vadd.xlane.f32.xlu0 %v474_v11 }
 0x2a2   : > { %v476_v13 = vpop.xlane.xlu0 %475 }
 0x2a3   : > { %2011 = vrcp.f32 %v476_v13 }
 0x2ad   : > { %v2012_v15 = vpop.eup %2011 }
 0x2ae   : > { %v478_v16 = vmul.f32 %v2012_v15, %v2010_v10 }
 0x2b0   : > { %479 = vst.msk [vmem:[%s2591_s6] sm:$0xff] %vm391_vm1, %v478_v16  ;;  %1773 = vmatmul.mubr.msk.f32.vlgmr.msra.gmra.mrb[2].mxu1 %vm391_vm1, %v478_v16 }
 0x2b1   : > { %1776 = vmatpush3.xpose.msk.msra.mxu1 %vm391_vm1, %v566_v14  ;;  %1777 = vmatprep.mubr.msk.f32.mxu1 %vm2274_vm0, %v2273_v0 }
 0x2b2   : > { %1849 = vmatprep.subr.bf16.mxu1 %v2276_v29 }
 0x2b4   : > { %1778 = vmatmul.mubr.msk.f32.vlgmr.msra.gmra.mrb[4].mxu1 %vm391_vm1, %v563_v17 }
 0x2b5   : > { %1793 = vmatprep.mubr.msk.f32.mxu1 %vm2274_vm0, %v2273_v0 }
 0x383   : > { %v549_v18 = vpop.f32.mrb[2].mxu1 }
 0x384   : > { %v1774_v19 = vpop.f32.mrb[3].mxu1 }
 0x387   : > { %v637_v20 = vpop.f32.mrb[4].mxu1 }
 0x388   : > { %v1779_v21 = vpop.f32.mrb[5].mxu1  ;;  %v641_v22 = vsel %vm391_vm1, %v637_v20, -inf }
 0x389   : > { %642 = vmax.xlane.f32.xlu0 %v641_v22 }
 0x39f   : > { %655 = vrot.lane.b32.xlu0 %v2586_v12, %s2275_s18 }
 0x3a3   : > { %1980 = vrot.lane.b32.xlu0 %v2608_v36, %s2275_s18 }
 0x3a7   : > { %1985 = vrot.lane.b32.xlu0 %v2614_v37, %s2275_s18 }
 0x3ab   : > { %921 = vrot.lane.b32.xlu0 %v2567_v1, %s2277_s25 }
 0x416   : > { %v643_v23 = vpop.xlane.xlu0 %642 }
 0x417   : > { %v644_v24 = vsub.f32 %v637_v20, %v643_v23 }
 0x419   : > { %v645_v25 = vmul.f32 1.442695, %v644_v24 }
 0x41a   : > { %v656_v28 = vpop.permute.xlu0 %655 }
 0x41b   : > { %2013 = vpow2.f32 %v645_v25  ;;  %1781 = vmatpush3.msra.mxu0 %v656_v28 }
 0x41c   : > { %1857 = vmatprep.subr.bf16.mxu0 %v2276_v29 }
 0x41e   : > { %v1981_v42 = vpop.permute.xlu0 %1980 }
 0x41f   : > { %v1983_v43 = vunpack.i.h.bf16 %v1981_v42  ;;  %v1982_v44 = vunpack.i.l.bf16 %v1981_v42 }
 0x421   : > { %v1850_v45 = vpack.c.bf16 %v1983_v43, %v1982_v44 }
 0x422   : > { %v1986_v46 = vpop.permute.xlu0 %1985 }
 0x423   : > { %1852 = vmatpush3.bf16.xpose.msk.msra.mxu1 %vm2622_vm2, %v1850_v45  ;;  %v1988_v47 = vunpack.i.h.bf16 %v1986_v46  ;;  %v1987_v48 = vunpack.i.l.bf16 %v1986_v46 }
 0x424   : > { %1853 = vmatprep.subr.bf16.mxu1 %v2276_v29 }
 0x425   : > { %v2014_v26 = vpop.eup %2013  ;;  %v1854_v49 = vpack.c.bf16 %v1988_v47, %v1987_v48 }
 0x426   : > { %v647_v27 = vsel %vm391_vm1, %v2014_v26, 0.0  ;;  %v922_v50 = vpop.permute.xlu0 %921 }
 0x427   : > { %648 = vadd.xlane.f32.xlu1 %v647_v27 }
 0x42b   : > { %1856 = vmatpush3.bf16.xpose.msk.msra.mxu1 %vm2622_vm2, %v1854_v49 }
 0x42c   : > { %1807 = vmatprep.subr.mxu1 %v2273_v0 }
 0x438   : > { %918 = vrot.lane.b32.xlu1 %v2571_v3, %s2277_s25 }
 0x4b4   : > { %v649_v38 = vpop.xlane.xlu1 %648 }
 0x4b5   : > { %2015 = vrcp.f32 %v649_v38 }
 0x4b8   : > { %v919_v53 = vpop.permute.xlu1 %918 }
 0x4bf   : > { %v2016_v39 = vpop.eup %2015 }
 0x4c0   : > { %v651_v40 = vmul.f32 %v2016_v39, %v2014_v26 }
 0x4c2   : > { %1690 = vst.msk [vmem:[%s2591_s6 + $0x8] sm:$0xff] %vm391_vm1, %v651_v40  ;;  %1783 = vmatmul.mubr.msk.f32.vlgmr.msra.gmra.mrb[0].mxu0 %vm391_vm1, %v651_v40 }
 0x4c3   : > { %1860 = vmatpush3.bf16.xpose.msk.msra.mxu0 %vm2622_vm2, %v1858_v32  ;;  %1804 = vmatprep.mubr.msk.f32.mxu0 %vm2274_vm0, %v2273_v0 }
 0x4c4   : > { %1861 = vmatprep.subr.bf16.mxu0 %v2276_v29 }
 0x4cb   : > { %1864 = vmatpush3.bf16.xpose.msk.msra.mxu0 %vm2622_vm2, %v1862_v35 }
 0x4cc   : > { %1812 = vmatprep.subr.mxu0 %v2273_v0 }
 0x4d2   : > { %1805 = vmatmul.mubr.msk.f32.vlgmr.msra.gmra.mrb[2].mxu0 %vm391_vm1, %v549_v18 }
 0x4d3   : > { %1814 = vmatprep.mubr.msk.f32.mxu0 %vm2274_vm0, %v2273_v0 }
 0x595   : > { %v727_v51 = vpop.f32.mrb[0].mxu0 }
 0x596   : > { %v1784_v52 = vpop.f32.mrb[1].mxu0  ;;  %1794 = vmatmul.mubr.msk.f32.vlgmr.msra.gmra.mrb[6].mxu1 %vm391_vm1, %v727_v51 }
 0x597   : > { %1808 = vmatpush3.xpose.msk.msra.mxu1 %vm391_vm1, %v922_v50  ;;  %1809 = vmatprep.mubr.msk.f32.mxu1 %vm2274_vm0, %v2273_v0 }
 0x598   : > { %1865 = vmatprep.subr.bf16.mxu1 %v2276_v29 }
 0x59a   : > { %1810 = vmatmul.mubr.msk.f32.vlgmr.msra.gmra.mrb[8].mxu1 %vm391_vm1, %v919_v53 }
 0x59b   : > { %1825 = vmatprep.mubr.msk.f32.mxu1 %vm2274_vm0, %v2273_v0 }
 0x5a5   : > { %v905_v54 = vpop.f32.mrb[2].mxu0 }
 0x5a6   : > { %v1806_v55 = vpop.f32.mrb[3].mxu0 }
 0x669   : > { %v820_v56 = vpop.f32.mrb[6].mxu1 }
 0x66a   : > { %v2654_v57 = vadd.f32 %v905_v54, %v820_v56  ;;  %v1795_v58 = vpop.f32.mrb[7].mxu1 }
 0x66d   : > { %v993_v59 = vpop.f32.mrb[8].mxu1 }
 0x66e   : > { %v1811_v60 = vpop.f32.mrb[9].mxu1  ;;  %v997_v61 = vsel %vm391_vm1, %v993_v59, -inf }
 0x66f   : > { %998 = vmax.xlane.f32.xlu0 %v997_v61 }
 0x685   : > { %1011 = vrot.lane.b32.xlu0 %v2586_v12, %s2277_s25 }
 0x689   : > { %1190 = vrot.lane.b32.xlu0 %v2571_v3, %s2278_s26 }
 0x6fc   : > { %v999_v62 = vpop.xlane.xlu0 %998 }
 0x6fd   : > { %v1000_v63 = vsub.f32 %v993_v59, %v999_v62 }
 0x6ff   : > { %v1001_v2 = vmul.f32 1.442695, %v1000_v63 }
 0x700   : > { %v1012_v6 = vpop.permute.xlu0 %1011 }
 0x701   : > { %2017 = vpow2.f32 %v1001_v2  ;;  %1813 = vmatpush3.msra.mxu0 %v1012_v6 }
 0x702   : > { %1828 = vmatprep.subr.mxu0 %v2273_v0 }
 0x704   : > { %v1191_v10 = vpop.permute.xlu0 %1190 }
 0x70b   : > { %v2018_v4 = vpop.eup %2017 }
 0x70c   : > { %v1003_v5 = vsel %vm391_vm1, %v2018_v4, 0.0 }
 0x70d   : > { %1004 = vadd.xlane.f32.xlu1 %v1003_v5 }
 0x71e   : > { %1193 = vrot.lane.b32.xlu1 %v2567_v1, %s2278_s26 }
 0x79a   : > { %v1005_v7 = vpop.xlane.xlu1 %1004 }
 0x79b   : > { %2019 = vrcp.f32 %v1005_v7 }
 0x79e   : > { %v1194_v9 = vpop.permute.xlu1 %1193 }
 0x7a5   : > { %v2020_v8 = vpop.eup %2019 }
 0x7a6   : > { %v1007_v3 = vmul.f32 %v2020_v8, %v2018_v4 }
 0x7a8   : > { %1704 = vst.msk [vmem:[%s2591_s6 + $0x10] sm:$0xff] %vm391_vm1, %v1007_v3  ;;  %1815 = vmatmul.mubr.msk.f32.vlgmr.msra.gmra.mrb[4].mxu0 %vm391_vm1, %v1007_v3 }
 0x7a9   : > { %1829 = vmatpush3.xpose.msk.msra.mxu0 %vm391_vm1, %v1194_v9  ;;  %1830 = vmatprep.mubr.msk.f32.mxu0 %vm2274_vm0, %v2273_v0 }
 0x7aa   : > { %1833 = vmatprep.subr.mxu0 %v2273_v0 }
 0x7ac   : > { %1831 = vmatmul.mubr.msk.f32.vlgmr.msra.gmra.mrb[6].mxu0 %vm391_vm1, %v1191_v10 }
 0x7ad   : > { %1835 = vmatprep.mubr.msk.f32.mxu0 %vm2274_vm0, %v2273_v0 }
 0x87b   : > { %v1083_v1 = vpop.f32.mrb[4].mxu0 }
 0x87c   : > { %v1816_v11 = vpop.f32.mrb[5].mxu0 }
 0x87f   : > { %v1265_v13 = vpop.f32.mrb[6].mxu0 }
 0x880   : > { %v1832_v14 = vpop.f32.mrb[7].mxu0  ;;  %v1269_v15 = vsel %vm391_vm1, %v1265_v13, -inf }
 0x881   : > { %1270 = vmax.xlane.f32.xlu0 %v1269_v15 }
 0x897   : > { %1283 = vrot.lane.b32.xlu0 %v2586_v12, %s2278_s26 }
 0x89b   : > { %1995 = vrot.lane.b32.xlu0 %v2608_v36, %s2278_s26 }
 0x89f   : > { %2000 = vrot.lane.b32.xlu0 %v2614_v37, %s2277_s25 }
 0x8a3   : > { %2005 = vrot.lane.b32.xlu0 %v2614_v37, %s2278_s26 }
 0x90e   : > { %v1271_v16 = vpop.xlane.xlu0 %1270 }
 0x90f   : > { %v1272_v17 = vsub.f32 %v1265_v13, %v1271_v16 }
 0x911   : > { %v1273_v18 = vmul.f32 1.442695, %v1272_v17 }
 0x912   : > { %v1284_v12 = vpop.permute.xlu0 %1283 }
 0x913   : > { %2021 = vpow2.f32 %v1273_v18  ;;  %1834 = vmatpush3.msra.mxu0 %v1284_v12 }
 0x914   : > { %1873 = vmatprep.subr.bf16.mxu0 %v2276_v29 }
 0x916   : > { %v1996_v22 = vpop.permute.xlu0 %1995 }
 0x917   : > { %v1998_v28 = vunpack.i.h.bf16 %v1996_v22  ;;  %v1997_v30 = vunpack.i.l.bf16 %v1996_v22 }
 0x919   : > { %v1874_v34 = vpack.c.bf16 %v1998_v28, %v1997_v30 }
 0x91a   : > { %v2001_v26 = vpop.permute.xlu0 %2000 }
 0x91b   : > { %v2003_v31 = vunpack.i.h.bf16 %v2001_v26  ;;  %v2002_v32 = vunpack.i.l.bf16 %v2001_v26 }
 0x91d   : > { %v2022_v19 = vpop.eup %2021  ;;  %v1870_v37 = vpack.c.bf16 %v2003_v31, %v2002_v32 }
 0x91e   : > { %v1275_v20 = vsel %vm391_vm1, %v2022_v19, 0.0 }
 0x91f   : > { %1276 = vadd.xlane.f32.xlu1 %v1275_v20 }
 0x930   : > { %1990 = vrot.lane.b32.xlu1 %v2608_v36, %s2277_s25  ;;  %v2006_v36 = vpop.permute.xlu0 %2005 }
 0x931   : > { %v2008_v38 = vunpack.i.h.bf16 %v2006_v36  ;;  %v2007_v39 = vunpack.i.l.bf16 %v2006_v36 }
 0x933   : > { %v1878_v40 = vpack.c.bf16 %v2008_v38, %v2007_v39 }
 0x9ac   : > { %v1277_v21 = vpop.xlane.xlu1 %1276 }
 0x9ad   : > { %2023 = vrcp.f32 %v1277_v21 }
 0x9b0   : > { %v1991_v23 = vpop.permute.xlu1 %1990 }
 0x9b1   : > { %v1993_v24 = vunpack.i.h.bf16 %v1991_v23  ;;  %v1992_v25 = vunpack.i.l.bf16 %v1991_v23 }
 0x9b3   : > { %v1866_v27 = vpack.c.bf16 %v1993_v24, %v1992_v25 }
 0x9b5   : > { %1868 = vmatpush3.bf16.xpose.msk.msra.mxu1 %vm2622_vm2, %v1866_v27 }
 0x9b6   : > { %1869 = vmatprep.subr.bf16.mxu1 %v2276_v29 }
 0x9b7   : > { %v2024_v33 = vpop.eup %2023 }
 0x9b8   : > { %v1279_v35 = vmul.f32 %v2024_v33, %v2022_v19 }
 0x9ba   : > { %1713 = vst.msk [vmem:[%s2591_s6 + $0x18] sm:$0xff] %vm391_vm1, %v1279_v35  ;;  %1836 = vmatmul.mubr.msk.f32.vlgmr.msra.gmra.mrb[8].mxu0 %vm391_vm1, %v1279_v35 }
 0x9bb   : > { %1876 = vmatpush3.bf16.xpose.msk.msra.mxu0 %vm2622_vm2, %v1874_v34  ;;  %1846 = vmatprep.mubr.msk.f32.mxu0 %vm2274_vm0, %v2273_v0 }
 0x9bc   : > { %1877 = vmatprep.subr.bf16.mxu0 %v2276_v29 }
 0x9bd   : > { %1872 = vmatpush3.bf16.xpose.msk.msra.mxu1 %vm2622_vm2, %v1870_v37 }
 0x9c3   : > { %1880 = vmatpush3.bf16.xpose.msk.msra.mxu0 %vm2622_vm2, %v1878_v40 }
 0x9c4   : > { %1826 = vmatmul.mubr.msk.f32.vlgmr.msra.gmra.mrb[10].mxu1 %vm391_vm1, %v1083_v1 }
 0xa8d   : > { %v1355_v42 = vpop.f32.mrb[8].mxu0 }
 0xa8e   : > { %v1837_v43 = vpop.f32.mrb[9].mxu0  ;;  %1847 = vmatmul.mubr.msk.f32.vlgmr.msra.gmra.mrb[10].mxu0 %vm391_vm1, %v1355_v42 }
 0xa97   : > { %v1176_v44 = vpop.f32.mrb[10].mxu1 }
 0xa98   : > { %v1180_v0 = vadd.f32 %v1176_v44, %v2654_v57  ;;  %v1827_v45 = vpop.f32.mrb[11].mxu1 }
 0xa99   : > { %2156 = shalt.err (!%p2153_p12)
}
 0xa9a   : > { %s2157_s20 = scalar_lea.hbm %s2711_s30, 512  ;;  %s2161_s17 = scalar_lea.hbm %s2850_s27, 1024 }
 0xa9b   : > { %p2158_p0 = scmp.ne.s32.totalorder %s2711_s30, %s2157_s20  ;;  %p2162_p9 = scmp.lt.u32.totalorder %s2711_s30, %s2850_s27 }
 0xa9c   : > { %p2163_p4 = scmp.lt.u32.totalorder %s2161_s17, %s2157_s20  ;;  %p2165_p5 = scmp.lt.u32.totalorder %s2157_s20, %s2711_s30 }
 0xa9d   : > { %p2159_p11 = pnand %p2158_p0, %p2851_p10 }
 0xa9e   : > { %p2164_p2 = por %p2163_p4, %p2162_p9 }
 0xa9f   : > { %p2160_p1 = pneg %p2159_p11 }
 0xaa0   : > { %p2166_p13 = por %p2165_p5, %p2164_p2 }
 0xaa2   : > { %p2167_p7 = pnand %p2166_p13, %p2160_p1 }
 0xaa4   : > { %2170 = shalt.err (!%p2167_p7)
}
 0xaa5   : > { %s2280_s18 = smov 128   ;;  %s2281_s12 = smov 8   ;;  %vm1461_vm3 = vcmask 261120  }
 0xaa6   : > { %1892 = dma.vmem_to_hbm [thread:$0]  (%p2851_p10), %s2713_s16, 512, %s2711_s30, %s1469_s28, %s2280_s18, %s2280_s18, %s2281_s12  }
 0xaa7   : > { %s2852_s26 = sld [smem:[#allocation25_spill]]  ;;  %s1723_s10 = sshll.u32 %s2257_s24, 7 }
 0xaa8   : > { %s375_s11 = scalar_lea.vmem [#allocation10], %s2542_s21  ;;  %s2853_s1 = sld [smem:[#allocation26_spill]] }
 0xaa9   : > { %s1483_s29 = sshll.u32 %s375_s11, 4  ;;  %s1464_s16 = scalar_lea.sflag [#allocation4], %s2539_s19  ;;  %s2749_s29 = int_to_ptr.vmem [resolvable:$true] %s1483_s29 }
 0xaaa   : > { %s2171_s30 = scalar_lea.vmem %s2749_s29, 128  ;;  %s2282_s24 = smov [#allocation10]  }
 0xaab   : > { %p2172_p3 = scmp.ne.s32.totalorder %s2749_s29, %s2171_s30  ;;  %s2175_s21 = sshll.u32 %s2282_s24, 4  ;;  %s2176_s21 = int_to_ptr.vmem [resolvable:$false] %s2175_s21 }
 0xaac   : > { %s2177_s28 = scalar_lea.vmem %s2176_s21, 256  ;;  %p2178_p12 = scmp.lt.s32.totalorder %s2749_s29, %s2176_s21 }
 0xaad   : > { %v1720_v41 = vld [vmem:[%s2852_s26] ss:$0 sm:$0xff]  ;;  %p2173_p6 = pnand %p2172_p3, %p2851_p10  ;;  %p2179_p0 = scmp.lt.s32.totalorder %s2177_s28, %s2171_s30 }
 0xaae   : > { %s2747_s15 = scalar_lea.hbm %s2853_s1, %s1723_s10 }
 0xaaf   : > { %p2174_p8 = pneg %p2173_p6  ;;  %p2180_p11 = por %p2179_p0, %p2178_p12 }
 0xab1   : > { %p2181_p1 = pnand %p2180_p11, %p2174_p8 }
 0xb61   : > { %v1448_v29 = vpop.f32.mrb[10].mxu0 }
 0xb62   : > { %v1452_v46 = vadd.f32 %v1448_v29, %v1180_v0  ;;  %v1848_v47 = vpop.f32.mrb[11].mxu0 }
 0xb64   : > { %v1460_v48 = vadd.f32 %v1720_v41, %v1452_v46 }
 0xb66   : > { %1462 = vst.msk [vmem:[%s375_s11] sm:$0xff] %vm1461_vm3, %v1460_v48 }
 0xb67   : > { %2184 = shalt.err (!%p2181_p1)
}
 0xb68   : > { %s2185_s19 = scalar_lea.hbm %s2747_s15, 128  ;;  %s2189_s9 = scalar_lea.hbm %s2853_s1, 256 }
 0xb69   : > { %p2186_p9 = scmp.ne.s32.totalorder %s2747_s15, %s2185_s19  ;;  %p2190_p5 = scmp.lt.u32.totalorder %s2747_s15, %s2853_s1 }
 0xb6a   : > { %p2191_p13 = scmp.lt.u32.totalorder %s2189_s9, %s2185_s19  ;;  %p2193_p3 = scmp.lt.u32.totalorder %s2185_s19, %s2747_s15 }
 0xb6b   : > { %p2187_p4 = pnand %p2186_p9, %p2851_p10 }
 0xb6c   : > { %p2192_p7 = por %p2191_p13, %p2190_p5 }
 0xb6d   : > { %p2188_p2 = pneg %p2187_p4 }
 0xb6e   : > { %p2194_p6 = por %p2193_p3, %p2192_p7 }
 0xb70   : > { %p2195_p8 = pnand %p2194_p6, %p2188_p2 }
 0xb72   : > { %2198 = shalt.err (!%p2195_p8)
}
 0xb73   : > { %1891 = dma.vmem_to_hbm [thread:$0]  (%p2851_p10), %s2749_s29, 128, %s2747_s15, %s1464_s16  }
 0xb74 PF: > { %s2854_s5 = sld [smem:[#allocation18_spill]]  ;;  %s2855_s18 = sld [smem:[#allocation23_spill]] }
 0xb75   : > { %s2856_s12 = sld [smem:[#allocation20_spill]] }
 0xb7a   : > { %s1512_s6 = sand.u32 1, %s2854_s5   ;;  %p2857_p12 = scmp.ne.s32.totalorder %s2855_s18, 0 }
 0xb7b   : > { %p2858_p0 = scmp.ge.s32.totalorder %s2856_s12, 2  ;;  %s1513_s25 = scalar_lea.sflag [#allocation4], %s1512_s6 }
 0xb7d   : > { %p1910_p11 = pnand %p2858_p0, %p2857_p12 }
 0xb7f   : > { %2236 = dma.done.wait (!%p1910_p11), %s1513_s25, 128  }
 0xb80   : > { %2238 = vsyncadd (!%p1910_p11), %s1513_s25, 4294967168  ;;  %s1522_s26 = scalar_lea.sflag [#allocation12], %s1512_s6 }
 0xb81   : > { %2240 = dma.done.wait (!%p1910_p11), %s1522_s26, 512  }
 0xb82   : > { %2242 = vsyncadd (!%p1910_p11), %s1522_s26, 4294966784  ;;  %s30_s26 = sadd.s32 1, %s2856_s12   ;;  %s2859_s14 = sld [smem:[#allocation22_spill]] }
 0xb83   : > { %p27_p1 = scmp.ge.s32.totalorder %s30_s26, 4   ;;  %s2860_s24 = sld [smem:[#allocation19_spill]] }
 0xb84   : > { %s2861_s25 = sld [smem:[#allocation21_spill]]  ;;  %s2862_s21 = smov %s2249_s22 }
 0xb85   : > { %s2863_s22 = smov %s2253_s23  ;;  %29 = sbr.rel (!%p27_p1) target bundleno = 16 (0x10), region = 133 }
 0xb88   : > { %s2864_s23 = smov %s2859_s14 }
 0xb8c   :  { %1527 = vsyncpa [#allocation3], 1 }
 0xb8d   :  { %1529 = vsyncpa [#allocation3 + $0x1], 1 }
 0xb8e   :  { %1530 = vsyncpa [#allocation6], 1 }
 0xb8f   :  { %1532 = vsyncpa [#allocation6 + $0x1], 1 }
 0xb90   :  { %1533 = vsyncpa [#allocation9], 1 }
 0xb91   :  { %1534 = vsyncpa [#allocation4], 1 }
 0xb92   :  { %1536 = vsyncpa [#allocation4 + $0x1], 1 }
 0xb93   :  { %1537 = vsyncpa [#allocation12], 1 }
 0xb94   :  { %1539 = vsyncpa [#allocation12 + $0x1], 1 }

</bundles_post_ra>
